<compile_context>
chip_gen: v7x
topology: tpu7x:2x2x1
jax: 0.10.0
libtpu: 0.0.40
codegen_flags: <defaults>
</compile_context>

<pallas_src>
import functools

import jax
import jax.numpy as jnp
from jax.experimental import pallas as pl
from jax.experimental.pallas import tpu as pltpu


def _round_up(n, m):
    return ((n + m - 1) // m) * m


def policy_kernel(x_ref, w1_ref, b1_ref, w2_ref, b2_ref, out_ref, *, compute_dtype):
    # Layer 1: Linear(in_dim, 256) + tanh.  Operands optionally bf16, f32 acc.
    x = x_ref[...].astype(compute_dtype)
    w1 = w1_ref[...].astype(compute_dtype)
    h = jnp.dot(x, w1, preferred_element_type=jnp.float32) + b1_ref[...]
    h = jnp.tanh(h)

    # Layer 2: Linear(256, action_num) + sigmoid.
    logits = (jnp.dot(h.astype(compute_dtype), w2_ref[...].astype(compute_dtype),
                      preferred_element_type=jnp.float32) + b2_ref[...])
    s = jax.nn.sigmoid(logits)

    # Softmax over actions.  sigmoid output is in (0,1) so exp cannot
    # overflow and the max-subtraction can be skipped.  Exact divide so rows
    # sum to 1 to f32 precision (approx reciprocal broke the 1e-3 check).
    e = jnp.exp(s)
    denom = jnp.sum(e, axis=1, keepdims=True)
    out_ref[...] = (e / denom).astype(out_ref.dtype)


def policy_network_forward(state, w1, b1, w2, b2, *, block_b=512,
                           compute_dtype=jnp.float32):
    """state: (B, D_in); w1: (D_in, 256); b1: (1,256)|(256,); w2: (256, A); b2: (1,A)|(A,).

    block_b: batch tile (multiple of 8).  Sweep 512-2048 for large B; on v7x
    keep cdiv(B, block_b) >= 2 so the "parallel" axis can use both TCs.
    compute_dtype: dtype of the matmul operands (f32 or bf16); accumulation
    and activations are always f32.
    """
    B, d_in = state.shape
    hidden = w1.shape[1]
    A = w2.shape[1]
    f32 = jnp.float32

    b1 = jnp.asarray(b1, f32).reshape(1, hidden)
    b2 = jnp.asarray(b2, f32).reshape(1, A)

    # Batch tile: multiple of 8 sublanes, capped at block_b.  No batch padding;
    # the tail block (if any) is a Pallas partial block.
    tb = max(8, min(_round_up(block_b, 8), _round_up(B, 8)))
    nb = pl.cdiv(B, tb)

    kernel = functools.partial(policy_kernel, compute_dtype=compute_dtype)

    out = pl.pallas_call(
        kernel,
        out_shape=jax.ShapeDtypeStruct((B, A), f32),
        grid=(nb,),
        in_specs=[
            pl.BlockSpec((tb, d_in), lambda i: (i, 0)),      # state tile: streams
            pl.BlockSpec((d_in, hidden), lambda i: (0, 0)),  # w1: VMEM-resident
            pl.BlockSpec((1, hidden), lambda i: (0, 0)),     # b1: resident
            pl.BlockSpec((hidden, A), lambda i: (0, 0)),     # w2: resident
            pl.BlockSpec((1, A), lambda i: (0, 0)),          # b2: resident
        ],
        out_specs=pl.BlockSpec((tb, A), lambda i: (i, 0)),   # narrow writeback
        compiler_params=pltpu.CompilerParams(
            dimension_semantics=("parallel",)),
    )(state.astype(f32), w1.astype(f32), b1, w2.astype(f32), b2)

    return out


def reference_forward(state, w1, b1, w2, b2):
    h = jnp.tanh(state @ w1 + b1.reshape(1, -1))
    s = jax.nn.sigmoid(h @ w2 + b2.reshape(1, -1))
    return jax.nn.softmax(s, axis=1)


if __name__ == "__main__":
    # Config consistent with the module:
    #   hidden_dim=32, embed_dim=16 -> in_dim = 2*32 + 2*16 = 96
    #   action_num = 4
    hidden_dim, embed_dim = 32, 16
    in_dim = hidden_dim * 2 + 2 * embed_dim
    temp_dim = 256
    action_num = 4

    key = jax.random.PRNGKey(0)
    k_x, k_w1, k_b1, k_w2, k_b2, k_x2, k_x3 = jax.random.split(key, 7)

    # Deterministic init mimicking torch.nn.Linear default: U(-1/sqrt(fan_in), ...)
    bound1 = 1.0 / jnp.sqrt(in_dim)
    bound2 = 1.0 / jnp.sqrt(temp_dim)
    w1 = jax.random.uniform(k_w1, (in_dim, temp_dim), jnp.float32, -bound1, bound1)
    b1 = jax.random.uniform(k_b1, (1, temp_dim), jnp.float32, -bound1, bound1)
    w2 = jax.random.uniform(k_w2, (temp_dim, action_num), jnp.float32, -bound2, bound2)
    b2 = jax.random.uniform(k_b2, (1, action_num), jnp.float32, -bound2, bound2)

    # Case 1: tiny action-selection batch (B=2) -> single grid step, no padding ops.
    state = jax.random.normal(k_x, (2, in_dim), jnp.float32)
    out = jax.block_until_ready(policy_network_forward(state, w1, b1, w2, b2))
    ref = reference_forward(state, w1, b1, w2, b2)
    assert out.shape == (2, action_num)
    assert jnp.allclose(out, ref, atol=2e-3, rtol=2e-3), "mismatch vs reference (B=2)"
    assert jnp.allclose(jnp.sum(out, axis=1), 1.0, atol=1e-4), "softmax rows must sum to 1"

    # Case 2: batch not a tile multiple (B=19, TB=8) -> 3 grid steps with a
    # partial tail block handled by Pallas (no wrapper-side batch padding).
    state2 = jax.random.normal(k_x2, (19, in_dim), jnp.float32)
    out2 = jax.block_until_ready(
        policy_network_forward(state2, w1, b1, w2, b2, block_b=8))
    ref2 = reference_forward(state2, w1, b1, w2, b2)
    assert out2.shape == (19, action_num)
    assert jnp.allclose(out2, ref2, atol=2e-3, rtol=2e-3), "mismatch vs reference (B=19)"
    assert jnp.allclose(jnp.sum(out2, axis=1), 1.0, atol=1e-4), "softmax rows must sum to 1"

    # Case 3: bf16 matmul operands (MXU fast path on v5e/v6e), f32 accumulate.
    state3 = jax.random.normal(k_x3, (33, in_dim), jnp.float32)
    out3 = jax.block_until_ready(
        policy_network_forward(state3, w1, b1, w2, b2, block_b=16,
                               compute_dtype=jnp.bfloat16))
    ref3 = reference_forward(state3, w1, b1, w2, b2)
    assert out3.shape == (33, action_num)
    assert jnp.allclose(out3, ref3, atol=2e-2, rtol=2e-2), "mismatch vs reference (bf16)"
    assert jnp.allclose(jnp.sum(out3, axis=1), 1.0, atol=1e-3), "softmax rows must sum to 1"

    print("KERNEL_OK")
</pallas_src>

<mosaic_0001>
module attributes {stable_mosaic.version = 11 : i64} {
  func.func @policy_kernel(%arg0: i32, %arg1: memref<8x96xf32, #tpu.memory_space<vmem>>, %arg2: memref<96x256xf32, #tpu.memory_space<vmem>>, %arg3: memref<1x256xf32, #tpu.memory_space<vmem>>, %arg4: memref<256x4xf32, #tpu.memory_space<vmem>>, %arg5: memref<1x4xf32, #tpu.memory_space<vmem>>, %arg6: memref<8x4xf32, #tpu.memory_space<vmem>>) attributes {dimension_semantics = [#tpu.dimension_semantics<parallel>], iteration_bounds = array<i64: 1>, scalar_prefetch = 0 : i64, scratch_operands = 0 : i64, tpu.core_type = #tpu.core_type<tc>, window_params = [{transform_indices = @transform_0, window_bounds = array<i64: 8, 96>}, {pipeline_mode = #tpu.pipeline_mode<synchronous>, transform_indices = @transform_1, window_bounds = array<i64: 96, 256>}, {pipeline_mode = #tpu.pipeline_mode<synchronous>, transform_indices = @transform_2, window_bounds = array<i64: 1, 256>}, {pipeline_mode = #tpu.pipeline_mode<synchronous>, transform_indices = @transform_3, window_bounds = array<i64: 256, 4>}, {pipeline_mode = #tpu.pipeline_mode<synchronous>, transform_indices = @transform_4, window_bounds = array<i64: 1, 4>}, {transform_indices = @transform_5, window_bounds = array<i64: 8, 4>}]} {
    %c0 = arith.constant 0 : index
    %c0_0 = arith.constant 0 : index
    %0 = vector.load %arg1[%c0, %c0_0] : memref<8x96xf32, #tpu.memory_space<vmem>>, vector<8x96xf32>
    %c0_1 = arith.constant 0 : index
    %c0_2 = arith.constant 0 : index
    %1 = vector.load %arg2[%c0_1, %c0_2] : memref<96x256xf32, #tpu.memory_space<vmem>>, vector<96x256xf32>
    %cst = arith.constant dense<0.000000e+00> : vector<8x256xf32>
    %2 = tpu.matmul %0, %1, %cst {dimension_numbers = #tpu.dot_dimension_numbers<[1], [0], [0], [1], [0, 0, 1, 1], [], []>} : vector<8x96xf32>, vector<96x256xf32>, vector<8x256xf32> -> vector<8x256xf32>
    %c0_3 = arith.constant 0 : index
    %c0_4 = arith.constant 0 : index
    %3 = vector.load %arg3[%c0_3, %c0_4] : memref<1x256xf32, #tpu.memory_space<vmem>>, vector<1x256xf32>
    %4 = vector.broadcast %3 : vector<1x256xf32> to vector<8x256xf32>
    %5 = arith.addf %2, %4 : vector<8x256xf32>
    %6 = math.tanh %5 : vector<8x256xf32>
    %c0_5 = arith.constant 0 : index
    %c0_6 = arith.constant 0 : index
    %7 = vector.load %arg4[%c0_5, %c0_6] : memref<256x4xf32, #tpu.memory_space<vmem>>, vector<256x4xf32>
    %cst_7 = arith.constant dense<0.000000e+00> : vector<8x4xf32>
    %8 = tpu.matmul %6, %7, %cst_7 {dimension_numbers = #tpu.dot_dimension_numbers<[1], [0], [0], [1], [0, 0, 1, 1], [], []>} : vector<8x256xf32>, vector<256x4xf32>, vector<8x4xf32> -> vector<8x4xf32>
    %c0_8 = arith.constant 0 : index
    %c0_9 = arith.constant 0 : index
    %9 = vector.load %arg5[%c0_8, %c0_9] : memref<1x4xf32, #tpu.memory_space<vmem>>, vector<1x4xf32>
    %10 = vector.broadcast %9 : vector<1x4xf32> to vector<8x4xf32>
    %11 = arith.addf %8, %10 : vector<8x4xf32>
    %12 = arith.negf %11 : vector<8x4xf32>
    %13 = math.exp %12 : vector<8x4xf32>
    %cst_10 = arith.constant 1.000000e+00 : f32
    %14 = vector.broadcast %cst_10 : f32 to vector<8x4xf32>
    %15 = arith.addf %14, %13 : vector<8x4xf32>
    %16 = arith.divf %14, %15 : vector<8x4xf32>
    %17 = math.exp %16 : vector<8x4xf32>
    %cst_11 = arith.constant dense<0.000000e+00> : vector<8xf32>
    %18 = vector.multi_reduction <add>, %17, %cst_11 [1] : vector<8x4xf32> to vector<8xf32>
    %19 = vector.shape_cast %18 : vector<8xf32> to vector<8x1xf32>
    %20 = vector.broadcast %19 : vector<8x1xf32> to vector<8x4xf32>
    %21 = arith.divf %17, %20 : vector<8x4xf32>
    %c0_12 = arith.constant 0 : index
    %c0_13 = arith.constant 0 : index
    %22 = vector.load %arg6[%c0_12, %c0_13] : memref<8x4xf32, #tpu.memory_space<vmem>>, vector<8x4xf32>
    tpu.vector_store %arg6[%c0_12, %c0_13], %21 {strides = array<i32>} : memref<8x4xf32, #tpu.memory_space<vmem>>, vector<8x4xf32>,
    return
  }
  func.func @transform_0(%arg0: i32) -> (i32, i32) {
    %c0_i32 = arith.constant 0 : i32
    %c0_i32_0 = arith.constant 0 : i32
    return %arg0, %c0_i32 : i32, i32
  }
  func.func @transform_1(%arg0: i32) -> (i32, i32) {
    %c0_i32 = arith.constant 0 : i32
    %c0_i32_0 = arith.constant 0 : i32
    %c0_i32_1 = arith.constant 0 : i32
    return %c0_i32, %c0_i32_0 : i32, i32
  }
  func.func @transform_2(%arg0: i32) -> (i32, i32) {
    %c0_i32 = arith.constant 0 : i32
    %c0_i32_0 = arith.constant 0 : i32
    %c0_i32_1 = arith.constant 0 : i32
    return %c0_i32, %c0_i32_0 : i32, i32
  }
  func.func @transform_3(%arg0: i32) -> (i32, i32) {
    %c0_i32 = arith.constant 0 : i32
    %c0_i32_0 = arith.constant 0 : i32
    %c0_i32_1 = arith.constant 0 : i32
    return %c0_i32, %c0_i32_0 : i32, i32
  }
  func.func @transform_4(%arg0: i32) -> (i32, i32) {
    %c0_i32 = arith.constant 0 : i32
    %c0_i32_0 = arith.constant 0 : i32
    %c0_i32_1 = arith.constant 0 : i32
    return %c0_i32, %c0_i32_0 : i32, i32
  }
  func.func @transform_5(%arg0: i32) -> (i32, i32) {
    %c0_i32 = arith.constant 0 : i32
    %c0_i32_0 = arith.constant 0 : i32
    return %arg0, %c0_i32 : i32, i32
  }
}

</mosaic_0001>

<bundles_post_ra>
// kernel: tpu_custom_call.1
= control target key start
LH: loop header
LB: loop body
LE: loop exit
PB: predicated region body
PF: predicated region fallthrough
CT: control target
= control target key end

     0   :  { %10 = vsyncpa [#allocation3], 0  ;;  %v409_v6 = vmov 0.0   ;;  %vm58_vm0 = vcmask 785408   ;;  %vm252_vm1 = vcmask 31744   ;;  %s632_s0 = inlined_call_operand.vmem [shape: f32[2,96], index: 0, kind: input, shape index: {}]   ;;  %s633_s1 = inlined_call_operand.vmem [shape: f32[96,256], index: 1, kind: input, shape index: {}]   ;;  %s634_s2 = inlined_call_operand.vmem [shape: f32[1,256], index: 2, kind: input, shape index: {}]   ;;  %s635_s3 = inlined_call_operand.vmem [shape: f32[256,4], index: 3, kind: input, shape index: {}]   ;;  %s636_s4 = inlined_call_operand.vmem [shape: f32[1,4], index: 4, kind: input, shape index: {}]   ;;  %s637_s5 = inlined_call_operand.hbm [shape: f32[2,4], index: 5, kind: output, shape index: {}]  }
   0x1   :  { %v23_v0 = vld [vmem:[%s633_s1 + $0x8] sm:$0xff]  ;;  %v25_v1 = vld [vmem:[%s633_s1 + $0x18] sm:$0xff]  ;;  %v22_v3 = vld [vmem:[%s633_s1] sm:$0xff]  ;;  %126 = vmatprep.mubr.f32.mxu0 %v409_v6 }
   0x2   :  { %v313_v2 = vpack.c.bf16 %v25_v1, %v23_v0  ;;  %v24_v4 = vld [vmem:[%s633_s1 + $0x10] sm:$0xff]  ;;  %v27_v5 = vld [vmem:[%s633_s1 + $0x28] sm:$0xff]  ;;  %v29_v8 = vld [vmem:[%s633_s1 + $0x38] sm:$0xff] }
   0x3   :  { %v315_v7 = vpack.c.bf16 %v24_v4, %v22_v3  ;;  %v26_v9 = vld [vmem:[%s633_s1 + $0x20] sm:$0xff]  ;;  %v28_v10 = vld [vmem:[%s633_s1 + $0x30] sm:$0xff]  ;;  %v317_v11 = vpack.c.bf16 %v29_v8, %v27_v5  ;;  %v31_v12 = vld [vmem:[%s633_s1 + $0x48] sm:$0xff] }
   0x4   :  { %314 = vmatprep.subr.bf16.mxu0 %v313_v2  ;;  %v33_v13 = vld [vmem:[%s633_s1 + $0x58] sm:$0xff]  ;;  %v319_v14 = vpack.c.bf16 %v28_v10, %v26_v9  ;;  %v30_v16 = vld [vmem:[%s633_s1 + $0x40] sm:$0xff]  ;;  %v32_v17 = vld [vmem:[%s633_s1 + $0x50] sm:$0xff] }
   0x5   :  { %316 = vmatpush1.bf16.msra.mxu0 %v315_v7  ;;  %v321_v15 = vpack.c.bf16 %v33_v13, %v31_v12  ;;  %v35_v18 = vld [vmem:[%s633_s1 + $0x68] sm:$0xff]  ;;  %v37_v19 = vld [vmem:[%s633_s1 + $0x78] sm:$0xff]  ;;  %v34_v20 = vld [vmem:[%s633_s1 + $0x60] sm:$0xff]  ;;  %v323_v22 = vpack.c.bf16 %v32_v17, %v30_v16 }
   0x6   :  { %318 = vmatprep.subr.bf16.mxu0 %v317_v11  ;;  %v36_v21 = vld [vmem:[%s633_s1 + $0x70] sm:$0xff]  ;;  %v39_v23 = vld [vmem:[%s633_s1 + $0x88] sm:$0xff]  ;;  %v41_v24 = vld [vmem:[%s633_s1 + $0x98] sm:$0xff]  ;;  %v325_v26 = vpack.c.bf16 %v37_v19, %v35_v18 }
   0x7   :  { %v151_v25 = vld [vmem:[%s635_s3 + $0x80] sm:$0xff]  ;;  %v152_v27 = vld [vmem:[%s635_s3 + $0x88] sm:$0xff]  ;;  %v153_v32 = vld [vmem:[%s635_s3 + $0x90] sm:$0xff]  ;;  %v327_v39 = vpack.c.bf16 %v36_v21, %v34_v20  ;;  %v329_v40 = vpack.c.bf16 %v41_v24, %v39_v23 }
   0x8   :  { %v135_v28 = vld [vmem:[%s635_s3] sm:$0xff]  ;;  %v136_v29 = vld [vmem:[%s635_s3 + $0x8] sm:$0xff]  ;;  %v337_v30 = vpack.c.bf16 %v152_v27, %v151_v25  ;;  %v154_v33 = vld [vmem:[%s635_s3 + $0x98] sm:$0xff] }
   0x9   :  { %320 = vmatpush1.bf16.msra.mxu0 %v319_v14  ;;  %v339_v31 = vpack.c.bf16 %v136_v29, %v135_v28  ;;  %v137_v34 = vld [vmem:[%s635_s3 + $0x10] sm:$0xff]  ;;  %v341_v35 = vpack.c.bf16 %v154_v33, %v153_v32  ;;  %v138_v36 = vld [vmem:[%s635_s3 + $0x18] sm:$0xff]  ;;  %v155_v37 = vld [vmem:[%s635_s3 + $0xa0] sm:$0xff] }
   0xa   :  { %322 = vmatprep.subr.bf16.mxu0 %v321_v15  ;;  %v156_v38 = vld [vmem:[%s635_s3 + $0xa8] sm:$0xff]  ;;  %338 = vmatprep.subr.bf16.mxu1 %v337_v30  ;;  %v38_v41 = vld [vmem:[%s633_s1 + $0x80] sm:$0xff]  ;;  %v40_v42 = vld [vmem:[%s633_s1 + $0x90] sm:$0xff]  ;;  %v343_v44 = vpack.c.bf16 %v138_v36, %v137_v34 }
   0xb   :  { %v43_v43 = vld [vmem:[%s633_s1 + $0xa8] sm:$0xff]  ;;  %340 = vmatpush3.bf16.msra.mxu1 %v339_v31  ;;  %v45_v45 = vld [vmem:[%s633_s1 + $0xb8] sm:$0xff]  ;;  %v345_v46 = vpack.c.bf16 %v156_v38, %v155_v37  ;;  %v139_v47 = vld [vmem:[%s635_s3 + $0x20] sm:$0xff]  ;;  %v331_v51 = vpack.c.bf16 %v40_v42, %v38_v41 }
   0xc   :  { %342 = vmatprep.subr.bf16.mxu1 %v341_v35  ;;  %v140_v48 = vld [vmem:[%s635_s3 + $0x28] sm:$0xff]  ;;  %v157_v49 = vld [vmem:[%s635_s3 + $0xb0] sm:$0xff]  ;;  %v158_v50 = vld [vmem:[%s635_s3 + $0xb8] sm:$0xff]  ;;  %v333_v52 = vpack.c.bf16 %v45_v45, %v43_v43 }
   0xd   :  { %324 = vmatpush1.bf16.msra.mxu0 %v323_v22  ;;  %v42_v53 = vld [vmem:[%s633_s1 + $0xa0] sm:$0xff]  ;;  %v44_v54 = vld [vmem:[%s633_s1 + $0xb0] sm:$0xff]  ;;  %v347_v55 = vpack.c.bf16 %v140_v48, %v139_v47  ;;  %v349_v56 = vpack.c.bf16 %v158_v50, %v157_v49  ;;  %v142_v58 = vld [vmem:[%s635_s3 + $0x38] sm:$0xff]  ;;  %v48_v22 = vlaneseq }
   0xe   :  { %326 = vmatprep.subr.bf16.mxu0 %v325_v26  ;;  %v141_v57 = vld [vmem:[%s635_s3 + $0x30] sm:$0xff]  ;;  %v335_v59 = vpack.c.bf16 %v44_v54, %v42_v53  ;;  %v21_v61 = vld [vmem:[%s632_s0] sm:$0xff]  ;;  %v160_v63 = vld [vmem:[%s635_s3 + $0xc8] sm:$0xff] }
   0xf   :  { %344 = vmatpush3.bf16.msra.mxu1 %v343_v44  ;;  %v351_v60 = vpack.c.bf16 %v142_v58, %v141_v57  ;;  %v159_v62 = vld [vmem:[%s635_s3 + $0xc0] sm:$0xff]  ;;  %v144_v2 = vld [vmem:[%s635_s3 + $0x48] sm:$0xff]  ;;  %v161_v4 = vld [vmem:[%s635_s3 + $0xd0] sm:$0xff]  ;;  %v49_v23 = vshrl.u32 %v48_v22, 7 }
  0x10   :  { %346 = vmatprep.subr.bf16.mxu1 %v345_v46  ;;  %v353_v0 = vpack.c.bf16 %v160_v63, %v159_v62  ;;  %v143_v1 = vld [vmem:[%s635_s3 + $0x40] sm:$0xff]  ;;  %v162_v5 = vld [vmem:[%s635_s3 + $0xd8] sm:$0xff]  ;;  %v145_v7 = vld [vmem:[%s635_s3 + $0x50] sm:$0xff] }
  0x11   :  { %328 = vmatpush1.bf16.msra.mxu0 %v327_v39  ;;  %v355_v3 = vpack.c.bf16 %v144_v2, %v143_v1  ;;  %v357_v6 = vpack.c.bf16 %v162_v5, %v161_v4  ;;  %v146_v8 = vld [vmem:[%s635_s3 + $0x58] sm:$0xff]  ;;  %v163_v10 = vld [vmem:[%s635_s3 + $0xe0] sm:$0xff]  ;;  %v164_v11 = vld [vmem:[%s635_s3 + $0xe8] sm:$0xff]  ;;  %v50_v24 = vsub.s32 0, %v49_v23  ;;  %v54_v26 = vsub.s32 1, %v49_v23 }
  0x12   :  { %330 = vmatprep.subr.bf16.mxu0 %v329_v40  ;;  %v359_v9 = vpack.c.bf16 %v146_v8, %v145_v7  ;;  %v147_v12 = vld [vmem:[%s635_s3 + $0x60] sm:$0xff]  ;;  %v361_v13 = vpack.c.bf16 %v164_v11, %v163_v10  ;;  %v148_v14 = vld [vmem:[%s635_s3 + $0x68] sm:$0xff]  ;;  %v165_v15 = vld [vmem:[%s635_s3 + $0xf0] sm:$0xff] }
  0x13   :  { %348 = vmatpush3.bf16.msra.mxu1 %v347_v55  ;;  %v166_v16 = vld [vmem:[%s635_s3 + $0xf8] sm:$0xff]  ;;  %v363_v17 = vpack.c.bf16 %v148_v14, %v147_v12  ;;  %v149_v19 = vld [vmem:[%s635_s3 + $0x70] sm:$0xff]  ;;  %v46_v25 = vld [vmem:[%s634_s2] sm:$0x3] }
  0x14   :  { %350 = vmatprep.subr.bf16.mxu1 %v349_v56  ;;  %v365_v18 = vpack.c.bf16 %v166_v16, %v165_v15  ;;  %v150_v20 = vld [vmem:[%s635_s3 + $0x78] sm:$0xff]  ;;  %v51_v27 = vrot.slane %v46_v25, %v50_v24  ;;  %v55_v28 = vrot.slane %v46_v25, %v54_v26  ;;  %v276_v36 = vld [vmem:[%s636_s4] ss:$0 sm:$0xff] }
  0x15   :  { %332 = vmatpush1.bf16.msra.mxu0 %v331_v51  ;;  %v367_v21 = vpack.c.bf16 %v150_v20, %v149_v19 }
  0x16   :  { %334 = vmatprep.subr.bf16.mxu0 %v333_v52 }
  0x17   :  { %352 = vmatpush3.bf16.msra.mxu1 %v351_v60 }
  0x18   :  { %354 = vmatprep.subr.bf16.mxu1 %v353_v0 }
  0x19   :  { %336 = vmatpush1.bf16.msra.mxu0 %v335_v59 }
  0x1b   :  { %356 = vmatpush3.bf16.msra.mxu1 %v355_v3 }
  0x1c   :  { %275 = vmatmul.mubr.msk.f32.vlgmr.msra.gmra.mrb[0].mxu0 %vm58_vm0, %v21_v61  ;;  %358 = vmatprep.subr.bf16.mxu1 %v357_v6 }
  0x1f   :  { %360 = vmatpush3.bf16.msra.mxu1 %v359_v9 }
  0x20   :  { %362 = vmatprep.subr.bf16.mxu1 %v361_v13 }
  0x23   :  { %364 = vmatpush3.bf16.msra.mxu1 %v363_v17 }
  0x24   :  { %366 = vmatprep.subr.bf16.mxu1 %v365_v18 }
  0x27   :  { %368 = vmatpush3.bf16.msra.mxu1 %v367_v21 }
  0xef   :  { %v128_v29 = vpop.f32.mrb[0].mxu0 }
  0xf0   :  { %v129_v30 = vadd.f32 %v128_v29, %v51_v27  ;;  %v130_v31 = vpop.f32.mrb[1].mxu0 }
  0xf1   :  { %v131_v32 = vadd.f32 %v130_v31, %v55_v28 }
  0xf3   :  { %373 = vtanh.f32 %v131_v32 }
  0xf4   :  { %375 = vtanh.f32 %v129_v30 }
  0xfd   :  { %v374_v33 = vpop.eup %373 }
  0xfe   :  { %v376_v34 = vpop.eup %375  ;;  %238 = vmatprep.mubr.f32.mxu1 %v374_v33 }
  0xff   :  { %239 = vmatmul.mubr.f32.vlgmr.msra.gmra.mrb[0].mxu1 %v376_v34 }
 0x1d2   :  { %v310_v35 = vpop.f32.mrb[0].mxu1 }
 0x1d3   :  { %v311_v37 = vpop.f32.mrb[1].mxu1 }
 0x1d4   :  { %v312_v38 = vadd.f32 %v311_v37, %v310_v35 }
 0x1d6   :  { %v241_v39 = vadd.f32 %v312_v38, %v276_v36 }
 0x1d8   :  { %v277_v40 = vmul.f32 -1.442695, %v241_v39 }
 0x1da   :  { %377 = vpow2.f32 %v277_v40 }
 0x1e4   :  { %v378_v41 = vpop.eup %377 }
 0x1e5   :  { %v247_v42 = vadd.f32 1.0, %v378_v41 }
 0x1e7   :  { %379 = vrcp.f32 %v247_v42 }
 0x1f1   :  { %v380_v43 = vpop.eup %379 }
 0x1f2   :  { %v250_v44 = vmul.f32 1.442695, %v380_v43 }
 0x1f4   :  { %381 = vpow2.f32 %v250_v44 }
 0x1fe   :  { %v382_v45 = vpop.eup %381 }
 0x1ff   :  { %v253_v46 = vsel %vm252_vm1, %v382_v45, 0.0 }
 0x200   :  { %254 = vadd.xlane.f32.xlu0 %v253_v46 }
 0x28d   :  { %v255_v47 = vpop.xlane.xlu0 %254 }
 0x28e   :  { %383 = vrcp.f32 %v255_v47 }
 0x298   :  { %v384_v48 = vpop.eup %383 }
 0x299   :  { %v257_v49 = vmul.f32 %v384_v48, %v382_v45 }
 0x29b   :  { %258 = vst.msk [vmem:[#allocation2] sm:$0xff] %vm252_vm1, %v257_v49 }
 0x29c   :  { %263 = vsyncadd [#allocation3], 96  ;;  %s410_s2 = smov [#allocation2]  }
 0x29d   :  { %s264_s4 = sshll.u32 %s410_s2, 4  ;;  %s265_s4 = int_to_ptr.vmem [resolvable:$true] %s264_s4 }
 0x29e   :  { %s385_s0 = scalar_lea.vmem %s265_s4, 32  ;;  %s389_s7 = scalar_lea.vmem %s265_s4, 128 }
 0x29f   :  { %p386_p0 = scmp.ne.s32.totalorder %s265_s4, %s385_s0  ;;  %p390_p1 = scmp.lt.s32.totalorder %s265_s4, %s265_s4 }
 0x2a0   :  { %p391_p2 = scmp.lt.s32.totalorder %s389_s7, %s385_s0 }
 0x2a2   :  { %p392_p3 = por %p391_p2, %p390_p1 }
 0x2a4   :  { %p393_p4 = pnand %p392_p3, %p386_p0 }
 0x2a6   :  { %396 = shalt.err (!%p393_p4)
}
 0x2a7   :  { %s397_s10 = scalar_lea.hbm %s637_s5, 32 }
 0x2a8   :  { %p398_p5 = scmp.ne.s32.totalorder %s637_s5, %s397_s10  ;;  %p401_p6 = scmp.lt.u32.totalorder %s397_s10, %s637_s5 }
 0x2aa   :  { %p403_p7 = pnand %p401_p6, %p398_p5 }
 0x2ac   :  { %406 = shalt.err (!%p403_p7)
}
 0x2ad   :  { %s411_s15 = smov 32   ;;  %s412_s16 = smov 2  }
 0x2ae   :  { %270 = dma.vmem_to_hbm [thread:$0]  %s265_s4, 32, %s637_s5, [#allocation3], %s411_s15, %s411_s15, %s412_s16  }
 0x2af   :  { %407 = dma.done.wait [#allocation3], 128  }
 0x2b0   :  { %408 = vsyncadd [#allocation3], 4294967168 }
 0x2b1   :  { %274 = vsyncpa [#allocation3], 1 }

</bundles_post_ra>
